<compile_context>
chip_gen: v7x
topology: tpu7x:2x2x1
jax: 0.10.0
libtpu: 0.0.40
codegen_flags: <defaults>
</compile_context>

<pallas_src>
import jax
import jax.numpy as jnp
from jax.experimental import pallas as pl
from jax.experimental.pallas import tpu as pltpu


class ToCatch(Exception):
    pass


# Below this many elements, plain JAX (fused by XLA) beats any kernel launch.
_SMALL_B_THRESHOLD = 1 << 16  # 64K elements


def _linear_kernel(wb_ref, x_ref, o_ref):
    # wb_ref: (2,) in SMEM -> [w, b] (scalar reads on the scalar slot).
    # x_ref, o_ref: (tile_rows, 128) VMEM tiles.
    # y = x * w + b : one vmul + vadd per 1024-elem vreg on the VPU; no MXU, no transpose.
    o_ref[...] = x_ref[...] * wb_ref[0] + wb_ref[1]


def _choose_tile_rows(rows, dtype, max_tile_rows):
    """Largest legal tile row count: multiple of the dtype's sublane packing, <= rows."""
    itemsize = jnp.dtype(dtype).itemsize
    sub = 8 * max(1, 4 // itemsize)  # f32 -> 8, bf16 -> 16, int8/fp8 -> 32 sublanes
    if rows <= sub:
        # Single block whose shape equals the full array extent (always legal).
        return rows
    return min(max_tile_rows, (rows // sub) * sub)


def _run_linear_2d(x2d, wb, tile_rows):
    rows, lane = x2d.shape
    n_tiles = pl.cdiv(rows, tile_rows)
    return pl.pallas_call(
        _linear_kernel,
        out_shape=jax.ShapeDtypeStruct((rows, lane), x2d.dtype),
        grid=(n_tiles,),
        in_specs=[
            pl.BlockSpec(memory_space=pltpu.MemorySpace.SMEM),  # fused [w, b] scalars
            pl.BlockSpec((tile_rows, lane), lambda i: (i, 0)),  # x tile (ragged last ok)
        ],
        out_specs=pl.BlockSpec((tile_rows, lane), lambda i: (i, 0)),
        compiler_params=pltpu.CompilerParams(
            dimension_semantics=("parallel",),  # independent tiles -> megacore-shardable
            vmem_limit_bytes=32 * 1024 * 1024,  # 4 MiB blocks, 2x(in+out) = 16 MiB << 32
        ),
    )(wb, x2d)


def pallas_linear(x, w, b, *, lane=128, max_tile_rows=8192, force_pallas=False):
    """Linear(1, 1) forward: y = x @ W^T + b, computed as a scalar FMA.

    x: [B, 1], w: [1, 1] (torch stores W as [out, in]), b: [1]. Returns [B, 1].
    """
    B, f_in = x.shape
    assert f_in == 1 and w.shape == (1, 1) and b.shape == (1,)
    dtype = x.dtype

    w_s = w.reshape(()).astype(dtype)
    b_s = b.reshape(()).astype(dtype)

    # Small-B bypass: the shipped workload is (8, 1); XLA fuses this for free.
    if (B < _SMALL_B_THRESHOLD and not force_pallas) or B < lane:
        return x * w_s + b_s

    wb = jnp.stack([w_s, b_s])  # single (2,) SMEM operand

    if B % lane == 0:
        # Fast path: reshape (B, 1) -> (rows, 128) is a contiguous bitcast; no pad/slice.
        rows = B // lane
        tile_rows = _choose_tile_rows(rows, dtype, max_tile_rows)
        y2d = _run_linear_2d(x.reshape(rows, lane), wb, tile_rows)
        return y2d.reshape(B, 1)

    # Ragged B: kernel on the 128-aligned prefix (zero-copy reshape), tail (<128 elems)
    # in plain JAX. Avoids full-array pad + slice passes over HBM.
    b_main = (B // lane) * lane
    rows = b_main // lane
    tile_rows = _choose_tile_rows(rows, dtype, max_tile_rows)
    y_main = _run_linear_2d(x[:b_main].reshape(rows, lane), wb, tile_rows).reshape(b_main, 1)
    y_tail = x[b_main:] * w_s + b_s
    return jnp.concatenate([y_main, y_tail], axis=0)


class ExceptionModule:
    """JAX/Pallas port of the PyTorch ExceptionModule."""

    def __init__(self, key):
        # torch.nn.Linear(1, 1): weight [1, 1], bias [1]; uniform(-1, 1) init (1/sqrt(1)).
        kw, kb = jax.random.split(key)
        bound = 1.0
        self.weight = jax.random.uniform(kw, (1, 1), jnp.float32, -bound, bound)
        self.bias = jax.random.uniform(kb, (1,), jnp.float32, -bound, bound)

    def net(self, x):
        # The Linear(1, 1) layer (small inputs take the XLA bypass, large ones the kernel).
        return pallas_linear(x, self.weight, self.bias)

    def forward(self, *inputs, **kwargs):
        # Exact semantics of the PyTorch forward: unconditionally raise ToCatch.
        # TODO(synk): raising a Python exception has no in-kernel Pallas equivalent;
        # it is reproduced here at the Python wrapper level.
        raise ToCatch

    __call__ = forward


if __name__ == "__main__":
    key = jax.random.PRNGKey(0)
    kmod, kx1, kx2, kx3 = jax.random.split(key, 4)

    module = ExceptionModule(kmod)

    # 1) Module-consistent tiny input (batch=8, features=1): takes the small-B bypass.
    x_small = jax.random.normal(kx1, (8, 1), jnp.float32)
    y_small = module.net(x_small)
    jax.block_until_ready(y_small)

    # 2) Exercise the Pallas kernel path explicitly (B multiple of 128 -> zero-copy path).
    x_kernel = jax.random.normal(kx2, (1024, 1), jnp.float32)
    y_kernel = pallas_linear(x_kernel, module.weight, module.bias, force_pallas=True)
    jax.block_until_ready(y_kernel)

    # 3) Exercise the ragged-B path (kernel on 128-aligned prefix + JAX tail).
    x_ragged = jax.random.normal(kx3, (1000, 1), jnp.float32)
    y_ragged = pallas_linear(x_ragged, module.weight, module.bias, force_pallas=True)
    jax.block_until_ready(y_ragged)

    # Sanity checks against plain-JAX reference.
    for xin, yout in ((x_small, y_small), (x_kernel, y_kernel), (x_ragged, y_ragged)):
        y_ref = xin @ module.weight.T + module.bias
        assert yout.shape == y_ref.shape, "shape mismatch"
        assert jnp.allclose(yout, y_ref, atol=1e-6), "Pallas linear mismatch"

    # Reproduce forward-pass semantics: it must raise ToCatch.
    try:
        module(x_small)
        raise AssertionError("forward() should have raised ToCatch")
    except ToCatch:
        pass

    print("KERNEL_OK")
</pallas_src>

<mosaic_0001>
module attributes {stable_mosaic.version = 11 : i64} {
  func.func @_linear_kernel(%arg0: i32, %arg1: memref<2xf32, #tpu.memory_space<smem>>, %arg2: memref<8x128xf32, #tpu.memory_space<vmem>>, %arg3: memref<8x128xf32, #tpu.memory_space<vmem>>) attributes {dimension_semantics = [#tpu.dimension_semantics<parallel>], iteration_bounds = array<i64: 1>, scalar_prefetch = 0 : i64, scratch_operands = 0 : i64, tpu.core_type = #tpu.core_type<tc>, window_params = [{transform_indices = @transform_0, window_bounds = array<i64: 2>}, {transform_indices = @transform_1, window_bounds = array<i64: 8, 128>}, {transform_indices = @transform_2, window_bounds = array<i64: 8, 128>}]} {
    %c0 = arith.constant 0 : index
    %c0_0 = arith.constant 0 : index
    %0 = vector.load %arg2[%c0, %c0_0] : memref<8x128xf32, #tpu.memory_space<vmem>>, vector<8x128xf32>
    %c0_1 = arith.constant 0 : index
    %1 = memref.load %arg1[%c0_1] : memref<2xf32, #tpu.memory_space<smem>>
    %2 = vector.broadcast %1 : f32 to vector<8x128xf32>
    %3 = arith.mulf %0, %2 : vector<8x128xf32>
    %c1 = arith.constant 1 : index
    %4 = memref.load %arg1[%c1] : memref<2xf32, #tpu.memory_space<smem>>
    %5 = vector.broadcast %4 : f32 to vector<8x128xf32>
    %6 = arith.addf %3, %5 : vector<8x128xf32>
    %c0_2 = arith.constant 0 : index
    %c0_3 = arith.constant 0 : index
    %7 = vector.load %arg3[%c0_2, %c0_3] : memref<8x128xf32, #tpu.memory_space<vmem>>, vector<8x128xf32>
    tpu.vector_store %arg3[%c0_2, %c0_3], %6 {strides = array<i32>} : memref<8x128xf32, #tpu.memory_space<vmem>>, vector<8x128xf32>,
    return
  }
  func.func @transform_0(%arg0: i32) -> i32 {
    %c0_i32 = arith.constant 0 : i32
    %c0_i32_0 = arith.constant 0 : i32
    return %c0_i32 : i32
  }
  func.func @transform_1(%arg0: i32) -> (i32, i32) {
    %c0_i32 = arith.constant 0 : i32
    %c0_i32_0 = arith.constant 0 : i32
    return %arg0, %c0_i32 : i32, i32
  }
  func.func @transform_2(%arg0: i32) -> (i32, i32) {
    %c0_i32 = arith.constant 0 : i32
    %c0_i32_0 = arith.constant 0 : i32
    return %arg0, %c0_i32 : i32, i32
  }
}

</mosaic_0001>

<bundles_post_ra>
// kernel: tpu_custom_call.1
= control target key start
LH: loop header
LB: loop body
LE: loop exit
PB: predicated region body
PF: predicated region fallthrough
CT: control target
= control target key end

     0   :  { %7 = vsyncpa [#allocation5], 0  ;;  %s177_s0 = inlined_call_operand.hbm [shape: f32[2], index: 0, kind: input, shape index: {}]   ;;  %s178_s1 = inlined_call_operand.hbm [shape: f32[8,128], index: 1, kind: input, shape index: {}]   ;;  %s179_s2 = inlined_call_operand.hbm [shape: f32[8,128], index: 2, kind: output, shape index: {}]  }
   0x1   :  { %8 = vsyncpa [#allocation3], 0 }
   0x2   :  { %9 = vsyncpa [#allocation4], 0  ;;  %s63_s11 = scalar_lea.hbm %s177_s0, 16 }
   0x3   :  { %p64_p0 = scmp.ne.s32.totalorder %s177_s0, %s63_s11  ;;  %p67_p1 = scmp.lt.u32.totalorder %s63_s11, %s177_s0 }
   0x5   :  { %p69_p2 = pnand %p67_p1, %p64_p0 }
   0x7   :  { %72 = shalt.err (!%p69_p2)
}
   0x8   :  { %s123_s16 = smov [#allocation2]   ;;  %s124_s19 = smov [#allocation6]  }
   0x9   :  { %17 = dma.hbm_to_smem %s177_s0, 16, %s123_s16, [#allocation5]  }
   0xa   :  { %s24_s20 = sshll.u32 %s124_s19, 4  ;;  %s73_s23 = scalar_lea.hbm %s178_s1, 128  ;;  %s25_s20 = int_to_ptr.vmem [resolvable:$true] %s24_s20 }
   0xb   :  { %p74_p3 = scmp.ne.s32.totalorder %s178_s1, %s73_s23  ;;  %p77_p4 = scmp.lt.u32.totalorder %s73_s23, %s178_s1 }
   0xd   :  { %p79_p5 = pnand %p77_p4, %p74_p3 }
   0xf   :  { %82 = shalt.err (!%p79_p5)
}
  0x10   :  { %s83_s28 = scalar_lea.vmem %s25_s20, 128  ;;  %p88_p7 = scmp.lt.s32.totalorder %s25_s20, %s25_s20 }
  0x11   :  { %p84_p6 = scmp.ne.s32.totalorder %s25_s20, %s83_s28  ;;  %p89_p8 = scmp.lt.s32.totalorder %s83_s28, %s83_s28 }
  0x13   :  { %p90_p9 = por %p89_p8, %p88_p7 }
  0x15   :  { %p91_p10 = pnand %p90_p9, %p84_p6 }
  0x17   :  { %94 = shalt.err (!%p91_p10)
}
  0x18   :  { %27 = dma.hbm_to_vmem [thread:$0]  %s178_s1, 128, %s25_s20, [#allocation3]  }
  0x19   :  { %117 = dma.done.wait [#allocation5], 16  }
  0x1a   :  { %118 = vsyncadd [#allocation5], 4294967280 }
  0x1b   :  { %119 = dma.done.wait [#allocation3], 128  }
  0x1c   :  { %120 = vsyncadd [#allocation3], 4294967168 }
  0x1d   :  { %34 = sfence }
  0x1e   :  { %s36_s30 = sld [smem:[#allocation2]]  ;;  %s59_s3 = sld [smem:[#allocation2 + $0x1]]  ;;  %v35_v0 = vld [vmem:[#allocation6] sm:$0xff] }
  0x1f   :  { %s125_s4 = smov [#allocation7]  }
  0x20   :  { %s49_s5 = sshll.u32 %s125_s4, 4  ;;  %s50_s5 = int_to_ptr.vmem [resolvable:$true] %s49_s5 }
  0x21   :  { %s95_s6 = scalar_lea.vmem %s50_s5, 128  ;;  %p100_p12 = scmp.lt.s32.totalorder %s50_s5, %s50_s5 }
  0x22   :  { %p96_p11 = scmp.ne.s32.totalorder %s50_s5, %s95_s6  ;;  %p101_p13 = scmp.lt.s32.totalorder %s95_s6, %s95_s6 }
  0x24   :  { %v37_v1 = vstv %s36_s30  ;;  %v40_v2 = vstv %s59_s3  ;;  %p102_p0 = por %p101_p13, %p100_p12 }
  0x25   :  { %v38_v3 = vmul.f32 %v37_v1, %v35_v0 }
  0x26   :  { %p103_p1 = pnand %p102_p0, %p96_p11 }
  0x27   :  { %v41_v4 = vadd.f32 %v40_v2, %v38_v3 }
  0x29   :  { %42 = vst [vmem:[#allocation7] sm:$0xff] %v41_v4 }
  0x2a   :  { %106 = shalt.err (!%p103_p1)
}
  0x2b   :  { %s107_s8 = scalar_lea.hbm %s179_s2, 128 }
  0x2c   :  { %p108_p2 = scmp.ne.s32.totalorder %s179_s2, %s107_s8  ;;  %p111_p3 = scmp.lt.u32.totalorder %s107_s8, %s179_s2 }
  0x2e   :  { %p113_p4 = pnand %p111_p3, %p108_p2 }
  0x30   :  { %116 = shalt.err (!%p113_p4)
}
  0x31   :  { %52 = dma.vmem_to_hbm [thread:$0]  %s50_s5, 128, %s179_s2, [#allocation4]  }
  0x32   :  { %121 = dma.done.wait [#allocation4], 128  }
  0x33   :  { %122 = vsyncadd [#allocation4], 4294967168 }
  0x34   :  { %56 = vsyncpa [#allocation3], 1 }
  0x35   :  { %57 = vsyncpa [#allocation4], 1 }
  0x36   :  { %58 = vsyncpa [#allocation5], 1 }

</bundles_post_ra>
